<compile_context>
chip_gen: v7x
topology: tpu7x:2x2x1
jax: 0.10.0
libtpu: 0.0.40
codegen_flags: <defaults>
</compile_context>

<pallas_src>
import functools

import jax
import jax.numpy as jnp
from jax.experimental import pallas as pl
from jax.experimental.pallas import tpu as pltpu

_LANE = 128
_SUB = 8


def _round_up(x, m):
    return (x + m - 1) // m * m


def _hybrid_embed_kernel(eo_ref, wm_ref, wd_ref, b_ref, o_ref, *, tile_m, row_shift):
    # eo_ref : (R_alloc, Kp) f32  -- fully VMEM-resident EO planes (fetched once)
    # wm_ref : (Kp, Ep)      bf16 -- fused weights for padded rows 2oy, 2oy+1
    # wd_ref : (Kp, Ep)      bf16 -- fused weights for padded row 2oy+2
    # b_ref  : (1, Ep)       f32  -- fused bias (conv bias folded through proj)
    # o_ref  : (tile_m, Ep)  f32  -- output tile (lane-dense, Ep multiple of 128)
    i = pl.program_id(0)
    base0 = pl.multiple_of(i * tile_m, _SUB)
    lhs0 = eo_ref[pl.ds(base0, tile_m), :].astype(jnp.bfloat16)
    acc = jnp.dot(lhs0, wm_ref[...], preferred_element_type=jnp.float32)

    base1 = pl.multiple_of(i * tile_m + row_shift, _SUB)
    lhs1 = eo_ref[pl.ds(base1, tile_m), :].astype(jnp.bfloat16)
    acc = acc + jnp.dot(lhs1, wd_ref[...], preferred_element_type=jnp.float32)

    acc = acc + b_ref[...]
    o_ref[...] = acc.astype(o_ref.dtype)


def hybrid_embed_forward(x_nchw, conv_w, conv_b, proj_w, proj_b, *, tile_m_target=512):
    """x_nchw: (B, Cin, H, W) f32. Returns (B, num_patches, embed_dim) f32."""
    B, Cin, H, W = x_nchw.shape
    assert H % 2 == 0 and W % 2 == 0, "stride-2 pad-1 stand-in backbone assumes even H, W"
    E = proj_w.shape[0]
    Ho, Wo = H // 2, W // 2

    # ---- EO-plane layout (cheap XLA rearrange in the wrapper, no 9x blow-up) ----
    x_nhwc = jnp.transpose(x_nchw, (0, 2, 3, 1))
    xp = jnp.pad(x_nhwc, ((0, 0), (1, 1), (1, 1), (0, 0)))          # (B, H+2, W+2, Cin)
    # unroll the 3 kw taps into channels: xw[b, r, ox, kw*Cin + c] = xp[b, r, 2ox+kw, c]
    xw = jnp.concatenate(
        [xp[:, :, kw: kw + 2 * Wo: 2, :] for kw in range(3)], axis=-1)
    # split padded rows by parity: even rows (2oy -> kh=0) / odd rows (2oy+1 -> kh=1);
    # the kh=2 tap (row 2oy+2) is the NEXT even row -> a +Wo_pad row shift once flattened.
    xw = xw.reshape(B, Ho + 1, 2, Wo, 3 * Cin)
    eo = jnp.concatenate([xw[:, :, 0], xw[:, :, 1]], axis=-1)        # (B, Ho+1, Wo, 6*Cin)

    K = 6 * Cin
    Kp = _round_up(K, _SUB)
    Ep = _round_up(E, _LANE)                 # lane-dense output / weight columns
    Wo_pad = _round_up(Wo, _SUB)             # keeps in-kernel row shifts 8-aligned

    eo = jnp.pad(eo, ((0, 0), (0, 0), (0, Wo_pad - Wo), (0, Kp - K)))
    M = B * (Ho + 1) * Wo_pad                # one GEMM row per (b, oy, ox)

    # ---- M tiling: big tiles, even grid (v7x has 2 TCs), no divisibility assert ----
    if M >= 2 * tile_m_target:
        tile_m = tile_m_target
        num_tiles = _round_up(pl.cdiv(M, tile_m), 2)
    else:
        num_tiles = 2
        tile_m = _round_up(pl.cdiv(M, 2), _SUB)
    M_pad = num_tiles * tile_m
    R_alloc = M_pad + Wo_pad                 # shifted slice never reads out of bounds

    eo_flat = eo.reshape(M, Kp)
    eo_flat = jnp.pad(eo_flat, ((0, R_alloc - M), (0, 0))).astype(jnp.float32)

    # ---- fuse conv + projection:  Wf[kh,kw,c,e] = sum_f conv_w[f,c,kh,kw] * proj_w[e,f]
    wf = jnp.einsum("fchw,ef->hwce", conv_w, proj_w)                 # (3, 3, Cin, E)
    half = 3 * Cin
    w_main = jnp.concatenate([wf[0].reshape(half, E), wf[1].reshape(half, E)], axis=0)
    w_down = jnp.concatenate([wf[2].reshape(half, E),
                              jnp.zeros((half, E), wf.dtype)], axis=0)
    w_main = jnp.pad(w_main, ((0, Kp - K), (0, Ep - E))).astype(jnp.bfloat16)
    w_down = jnp.pad(w_down, ((0, Kp - K), (0, Ep - E))).astype(jnp.bfloat16)
    b_fused = conv_b @ proj_w.T + proj_b
    b_fused = jnp.pad(b_fused, (0, Ep - E)).reshape(1, Ep).astype(jnp.float32)

    # ---- explicit VMEM budget (resident EO + weights + double-buffered out tiles) ----
    vmem_limit = int(
        2 * R_alloc * Kp * 4            # resident EO planes (with buffering headroom)
        + 4 * Kp * Ep * 2               # both bf16 weight tables
        + 2 * Ep * 4                    # bias
        + 4 * tile_m * Ep * 4           # double-buffered output tiles
        + (2 << 20))                    # slack

    kernel = functools.partial(_hybrid_embed_kernel, tile_m=tile_m, row_shift=Wo_pad)
    out = pl.pallas_call(
        kernel,
        out_shape=jax.ShapeDtypeStruct((M_pad, Ep), jnp.float32),
        grid=(num_tiles,),
        in_specs=[
            pl.BlockSpec((R_alloc, Kp), lambda i: (0, 0)),   # resident, fetched once
            pl.BlockSpec((Kp, Ep), lambda i: (0, 0)),
            pl.BlockSpec((Kp, Ep), lambda i: (0, 0)),
            pl.BlockSpec((1, Ep), lambda i: (0, 0)),
        ],
        out_specs=pl.BlockSpec((tile_m, Ep), lambda i: (i, 0)),
        compiler_params=pltpu.CompilerParams(
            dimension_semantics=("parallel",),
            vmem_limit_bytes=vmem_limit),
    )(eo_flat, w_main, w_down, b_fused)

    out = out[:M].reshape(B, Ho + 1, Wo_pad, Ep)[:, :Ho, :Wo, :E]
    return out.reshape(B, Ho * Wo, E)


def reference_forward(x_nchw, conv_w, conv_b, proj_w, proj_b):
    """Pure-JAX f32 reference of the same HybridEmbed forward (NCHW conv)."""
    B = x_nchw.shape[0]
    Cfeat = conv_w.shape[0]
    dn = jax.lax.conv_dimension_numbers(
        x_nchw.shape, conv_w.shape, ("NCHW", "OIHW", "NCHW"))
    feat = jax.lax.conv_general_dilated(
        x_nchw, conv_w, window_strides=(2, 2), padding=((1, 1), (1, 1)),
        dimension_numbers=dn) + conv_b[None, :, None, None]
    Ho, Wo = feat.shape[2], feat.shape[3]
    tok = feat.reshape(B, Cfeat, Ho * Wo).transpose(0, 2, 1)
    return tok @ proj_w.T + proj_b


if __name__ == "__main__":
    # Small deterministic setup: B=2, in_chans=4, img=16x16,
    # feature_dim=8 (backbone conv channels), embed_dim=32.
    # TODO(synk): the real timm CNN backbone (multi-stage, feature_info) is not
    # translated; a single Conv2d(Cin, Cfeat, 3, stride=2, pad=1) stands in.
    B, Cin, H, W = 2, 4, 16, 16
    Cfeat, E = 8, 32

    key = jax.random.PRNGKey(0)
    kx, kcw, kcb, kpw, kpb = jax.random.split(key, 5)

    x = jax.random.normal(kx, (B, Cin, H, W), dtype=jnp.float32)
    conv_w = 0.1 * jax.random.normal(kcw, (Cfeat, Cin, 3, 3), dtype=jnp.float32)
    conv_b = 0.1 * jax.random.normal(kcb, (Cfeat,), dtype=jnp.float32)
    proj_w = 0.1 * jax.random.normal(kpw, (E, Cfeat), dtype=jnp.float32)
    proj_b = 0.1 * jax.random.normal(kpb, (E,), dtype=jnp.float32)

    out = jax.block_until_ready(hybrid_embed_forward(x, conv_w, conv_b, proj_w, proj_b))
    ref = jax.block_until_ready(reference_forward(x, conv_w, conv_b, proj_w, proj_b))

    assert out.shape == (B, (H // 2) * (W // 2), E), out.shape
    max_err = float(jnp.max(jnp.abs(out - ref)))
    # bf16 matmul operands + fused (conv x proj) weights -> tolerance reflects bf16 rounding.
    assert jnp.allclose(out, ref, rtol=5e-2, atol=5e-2), max_err

    print("KERNEL_OK")
</pallas_src>

<mosaic_0001>
module attributes {stable_mosaic.version = 11 : i64} {
  func.func @_hybrid_embed_kernel(%arg0: i32, %arg1: memref<152x24xf32, #tpu.memory_space<vmem>>, %arg2: memref<24x128xbf16, #tpu.memory_space<vmem>>, %arg3: memref<24x128xbf16, #tpu.memory_space<vmem>>, %arg4: memref<1x128xf32, #tpu.memory_space<vmem>>, %arg5: memref<72x128xf32, #tpu.memory_space<vmem>>) attributes {dimension_semantics = [#tpu.dimension_semantics<parallel>], iteration_bounds = array<i64: 2>, scalar_prefetch = 0 : i64, scratch_operands = 0 : i64, tpu.core_type = #tpu.core_type<tc>, window_params = [{pipeline_mode = #tpu.pipeline_mode<synchronous>, transform_indices = @transform_0, window_bounds = array<i64: 152, 24>}, {pipeline_mode = #tpu.pipeline_mode<synchronous>, transform_indices = @transform_1, window_bounds = array<i64: 24, 128>}, {pipeline_mode = #tpu.pipeline_mode<synchronous>, transform_indices = @transform_2, window_bounds = array<i64: 24, 128>}, {pipeline_mode = #tpu.pipeline_mode<synchronous>, transform_indices = @transform_3, window_bounds = array<i64: 1, 128>}, {transform_indices = @transform_4, window_bounds = array<i64: 72, 128>}]} {
    %c72_i32 = arith.constant 72 : i32
    %0 = arith.muli %arg0, %c72_i32 : i32
    %1 = tpu.assume_multiple %0, 8 : i32
    %2 = arith.index_cast %1 : i32 to index
    %c0 = arith.constant 0 : index
    %3 = vector.load %arg1[%2, %c0] : memref<152x24xf32, #tpu.memory_space<vmem>>, vector<72x24xf32>
    %4 = arith.truncf %3 : vector<72x24xf32> to vector<72x24xbf16>
    %c0_0 = arith.constant 0 : index
    %c0_1 = arith.constant 0 : index
    %5 = vector.load %arg2[%c0_0, %c0_1] : memref<24x128xbf16, #tpu.memory_space<vmem>>, vector<24x128xbf16>
    %cst = arith.constant dense<0.000000e+00> : vector<72x128xf32>
    %6 = tpu.matmul %4, %5, %cst {dimension_numbers = #tpu.dot_dimension_numbers<[1], [0], [0], [1], [0, 0, 1, 1], [], []>} : vector<72x24xbf16>, vector<24x128xbf16>, vector<72x128xf32> -> vector<72x128xf32>
    %c72_i32_2 = arith.constant 72 : i32
    %7 = arith.muli %arg0, %c72_i32_2 : i32
    %c8_i32 = arith.constant 8 : i32
    %8 = arith.addi %7, %c8_i32 : i32
    %9 = tpu.assume_multiple %8, 8 : i32
    %10 = arith.index_cast %9 : i32 to index
    %c0_3 = arith.constant 0 : index
    %11 = vector.load %arg1[%10, %c0_3] : memref<152x24xf32, #tpu.memory_space<vmem>>, vector<72x24xf32>
    %12 = arith.truncf %11 : vector<72x24xf32> to vector<72x24xbf16>
    %c0_4 = arith.constant 0 : index
    %c0_5 = arith.constant 0 : index
    %13 = vector.load %arg3[%c0_4, %c0_5] : memref<24x128xbf16, #tpu.memory_space<vmem>>, vector<24x128xbf16>
    %cst_6 = arith.constant dense<0.000000e+00> : vector<72x128xf32>
    %14 = tpu.matmul %12, %13, %cst_6 {dimension_numbers = #tpu.dot_dimension_numbers<[1], [0], [0], [1], [0, 0, 1, 1], [], []>} : vector<72x24xbf16>, vector<24x128xbf16>, vector<72x128xf32> -> vector<72x128xf32>
    %15 = arith.addf %6, %14 : vector<72x128xf32>
    %c0_7 = arith.constant 0 : index
    %c0_8 = arith.constant 0 : index
    %16 = vector.load %arg4[%c0_7, %c0_8] : memref<1x128xf32, #tpu.memory_space<vmem>>, vector<1x128xf32>
    %17 = vector.broadcast %16 : vector<1x128xf32> to vector<72x128xf32>
    %18 = arith.addf %15, %17 : vector<72x128xf32>
    %c0_9 = arith.constant 0 : index
    %c0_10 = arith.constant 0 : index
    %19 = vector.load %arg5[%c0_9, %c0_10] : memref<72x128xf32, #tpu.memory_space<vmem>>, vector<72x128xf32>
    tpu.vector_store %arg5[%c0_9, %c0_10], %18 {strides = array<i32>} : memref<72x128xf32, #tpu.memory_space<vmem>>, vector<72x128xf32>,
    return
  }
  func.func @transform_0(%arg0: i32) -> (i32, i32) {
    %c0_i32 = arith.constant 0 : i32
    %c0_i32_0 = arith.constant 0 : i32
    %c0_i32_1 = arith.constant 0 : i32
    return %c0_i32, %c0_i32_0 : i32, i32
  }
  func.func @transform_1(%arg0: i32) -> (i32, i32) {
    %c0_i32 = arith.constant 0 : i32
    %c0_i32_0 = arith.constant 0 : i32
    %c0_i32_1 = arith.constant 0 : i32
    return %c0_i32, %c0_i32_0 : i32, i32
  }
  func.func @transform_2(%arg0: i32) -> (i32, i32) {
    %c0_i32 = arith.constant 0 : i32
    %c0_i32_0 = arith.constant 0 : i32
    %c0_i32_1 = arith.constant 0 : i32
    return %c0_i32, %c0_i32_0 : i32, i32
  }
  func.func @transform_3(%arg0: i32) -> (i32, i32) {
    %c0_i32 = arith.constant 0 : i32
    %c0_i32_0 = arith.constant 0 : i32
    %c0_i32_1 = arith.constant 0 : i32
    return %c0_i32, %c0_i32_0 : i32, i32
  }
  func.func @transform_4(%arg0: i32) -> (i32, i32) {
    %c0_i32 = arith.constant 0 : i32
    %c0_i32_0 = arith.constant 0 : i32
    return %arg0, %c0_i32 : i32, i32
  }
}

</mosaic_0001>

<bundles_post_ra>
// kernel: tpu_custom_call.1
= control target key start
LH: loop header
LB: loop body
LE: loop exit
PB: predicated region body
PF: predicated region fallthrough
CT: control target
= control target key end

     0   :  { %9 = vsyncpa [#allocation3], 0  ;;  %s921_s0 = inlined_call_operand.vmem [shape: f32[152,24], index: 0, kind: input, shape index: {}]   ;;  %s922_s1 = inlined_call_operand.vmem [shape: bf16[24,128], index: 1, kind: input, shape index: {}]   ;;  %s923_s2 = inlined_call_operand.vmem [shape: bf16[24,128], index: 2, kind: input, shape index: {}]   ;;  %s924_s3 = inlined_call_operand.vmem [shape: f32[1,128], index: 3, kind: input, shape index: {}]   ;;  %s925_s4 = inlined_call_operand.hbm [shape: f32[144,128], index: 4, kind: output, shape index: {}]  }
   0x1   :  { %11 = vsyncpa [#allocation3 + $0x1], 0  ;;  %s745_s15 = smov 0   ;;  %s747_s16 = smov 0  }
   0x2   :  { %s749_s17 = smov 0   ;;  %s751_s18 = smov 0  }
   0x3 LB: > { %s766_s19 = sadd.s32 4294967295, %s713_s18   ;;  %s510_s20 = sadd.s32 4294967294, %s713_s18   ;;  %s713_s18 = sphi %s751_s18, %s931_s18   ;;  %s709_s17 = sphi %s749_s17, %s930_s17   ;;  %s705_s16 = sphi %s747_s16, %s929_s16   ;;  %s701_s15 = sphi %s745_s15, %s928_s15  }
   0x4   : > { %s770_s21 = sadd.s32 1, %s713_s18   ;;  %s108_s22 = sadd.s32 1, %s709_s17 }
   0x5   : > { %s105_s23 = ssub.s32 %s713_s18, %s770_s21  ;;  %p118_p0 = scmp.ne.s32.totalorder %s709_s17, %s705_s16 }
   0x6   : > { %p106_p1 = scmp.eq.s32.totalorder %s105_s23, 0  ;;  %p119_p2 = scmp.eq.s32.totalorder %s766_s19, 1 }
   0x7   : > { %p124_p3 = scmp.ne.s32.totalorder %s705_s16, %s701_s15  ;;  %p125_p4 = scmp.eq.s32.totalorder %s510_s20, 1 }
   0x8   : > { %s781_s24 = scalar_select %p106_p1, %s709_s17, %s108_s22  }
   0x9   : > { %p783_p5 = por %p119_p2, %p118_p0  ;;  %p787_p6 = por %p125_p4, %p124_p3 }
   0xa   : > { %p512_p7 = scmp.ge.s32.totalorder %s713_s18, 1  ;;  %p155_p8 = scmp.lt.s32.totalorder %s713_s18, 3 }
   0xc   : > { %p156_p9 = pnand %p512_p7, %p155_p8 }
   0xd   : > { %v647_v0 = vld [vmem:[%s923_s2] sm:$0xff] (!%p156_p9)   ;;  %v715_v1 = vmov (!%p156_p9), 0.0   ;;  %vm241_vm0 = vcmask (!%p156_p9), 1043456   ;;  %v649_v3 = vld [vmem:[%s923_s2 + $0x8] ss:$0 sps:$4 sm:$0xff] (!%p156_p9)   ;;  %s178_s9 = smul.u32 (!%p156_p9), 72, %s766_s19 }
   0xe   : > { %159 = sbr.rel (%p156_p9) target bundleno = 285 (0x11d), region = 36  ;;  %555 = vmatprep.subr.bf16.mxu0 (!%p156_p9), %v715_v1  ;;  %579 = vmatprep.subr.bf16.mxu1 (!%p156_p9), %v715_v1  ;;  %v648_v2 = vld [vmem:[%s922_s1] sm:$0xff] (!%p156_p9)   ;;  %v650_v4 = vld [vmem:[%s922_s1 + $0x8] ss:$0 sps:$4 sm:$0xff] (!%p156_p9)   ;;  %v243_v5 = vsel (!%p156_p9), %vm241_vm0, %v649_v3, 0  ;;  %vm716_vm1 = vmmov (!%p156_p9), 0  }
   0xf   : > { %556 = vmatpush3.bf16.msra.mxu0 (!%p156_p9), %v647_v0  ;;  %580 = vmatpush3.bf16.msra.mxu1 (!%p156_p9), %v648_v2  ;;  %v342_v6 = vsel (!%p156_p9), %vm241_vm0, %v650_v4, 0  ;;  %s811_s12 = scalar_lea.vmem (!%p156_p9), %s921_s0, %s178_s9  ;;  %vm225_vm2 = vcmask (!%p156_p9), 195584   ;;  %s173_s13 = sand.u32 (!%p156_p9), 1, %s705_s16   ;;  %v847_v29 = vld [vmem:[%s924_s3] ss:$0 sm:$0xff] (!%p156_p9) }
  0x10   : > { %557 = vmatprep.subr.bf16.mxu0 (!%p156_p9), %v715_v1  ;;  %581 = vmatprep.subr.bf16.mxu1 (!%p156_p9), %v715_v1  ;;  %v513_v7 = vld [vmem:[%s811_s12 + $0x8] sm:$0xff] (!%p156_p9)  ;;  %v514_v8 = vld [vmem:[%s811_s12 + $0x10] sm:$0xff] (!%p156_p9)  ;;  %v180_v9 = vld [vmem:[%s811_s12] sm:$0xff] (!%p156_p9)  ;;  %s603_s14 = smul.u32 (!%p156_p9), 72, %s173_s13  ;;  %s717_s7 = smov (!%p156_p9), [#allocation2]  }
  0x11   : > { %559 = vmatprep.mubr.msk.bf16.mxu0 (!%p156_p9), %vm716_vm1, %v715_v1  ;;  %583 = vmatprep.mubr.msk.bf16.mxu1 (!%p156_p9), %vm716_vm1, %v715_v1  ;;  %v208_v10 = vpack.c.bf16 (!%p156_p9), %v514_v8, %v513_v7  ;;  %v189_v11 = vpack.c.bf16 (!%p156_p9), %v513_v7, %v180_v9  ;;  %v515_v12 = vld [vmem:[%s811_s12 + $0x18] sm:$0xff] (!%p156_p9)  ;;  %v516_v13 = vld [vmem:[%s811_s12 + $0x20] sm:$0xff] (!%p156_p9)  ;;  %v517_v16 = vld [vmem:[%s811_s12 + $0x28] sm:$0xff] (!%p156_p9)  ;;  %s540_s27 = smul.u32 (!%p156_p9), 1152, %s766_s19  ;;  %s880_s19 = scalar_lea.sflag (!%p156_p9), [#allocation3], %s173_s13 }
  0x12   : > { %v209_v14 = vpack.c.bf16 (!%p156_p9), %v516_v13, %v515_v12  ;;  %v190_v15 = vpack.c.bf16 (!%p156_p9), %v515_v12, %v514_v8  ;;  %v518_v17 = vld [vmem:[%s811_s12 + $0x30] sm:$0xff] (!%p156_p9)  ;;  %v191_v19 = vpack.c.bf16 (!%p156_p9), %v517_v16, %v516_v13  ;;  %v519_v20 = vld [vmem:[%s811_s12 + $0x38] sm:$0xff] (!%p156_p9)  ;;  %v520_v21 = vld [vmem:[%s811_s12 + $0x40] sm:$0xff] (!%p156_p9)  ;;  %s850_s23 = scalar_lea.vmem (!%p156_p9), [#allocation2], %s603_s14  ;;  %s655_s8 = sshll.u32 (!%p156_p9), %s717_s7, 4  ;;  %s656_s8 = int_to_ptr.vmem [resolvable:$false] %s655_s8 }
  0x13   : > { %558 = vmatpush3.bf16.msra.mxu0 (!%p156_p9), %v243_v5  ;;  %582 = vmatpush3.bf16.msra.mxu1 (!%p156_p9), %v342_v6  ;;  %v210_v18 = vpack.c.bf16 (!%p156_p9), %v518_v17, %v517_v16  ;;  %v211_v22 = vpack.c.bf16 (!%p156_p9), %v520_v21, %v519_v20  ;;  %v192_v23 = vpack.c.bf16 (!%p156_p9), %v519_v20, %v518_v17  ;;  %v521_v24 = vld [vmem:[%s811_s12 + $0x48] sm:$0xff] (!%p156_p9)  ;;  %s455_s28 = sshll.u32 (!%p156_p9), %s850_s23, 4  ;;  %s872_s5 = scalar_lea.hbm (!%p156_p9), %s925_s4, %s540_s27  ;;  %s874_s28 = int_to_ptr.vmem [resolvable:$true] %s455_s28 }
  0x14   : > { %v212_v25 = vpack.c.bf16 (!%p156_p9), %v521_v24, %v521_v24  ;;  %v193_v26 = vpack.c.bf16 (!%p156_p9), %v520_v21, %v520_v21  ;;  %s651_s6 = scalar_lea.vmem (!%p156_p9), %s874_s28, 1152  ;;  %s657_s9 = scalar_lea.vmem (!%p156_p9), %s656_s8, 2304 }
  0x15   : > { %p652_p10 = scmp.ne.s32.totalorder %s874_s28, %s651_s6  ;;  %p658_p13 = scmp.lt.s32.totalorder %s874_s28, %s656_s8 }
  0x16   : > { %560 = vmatmul.mubr.msk.bf16.vlgmr.msra.gmra.mrb[0].mxu0 %vm225_vm2, %v208_v10  ;;  %584 = vmatmul.mubr.msk.bf16.vlgmr.msra.gmra.mrb[0].mxu1 %vm225_vm2, %v189_v11  ;;  %p659_p0 = scmp.lt.s32.totalorder %s657_s9, %s651_s6 }
  0x17   : > { %563 = vmatprep.mubr.msk.bf16.mxu0 %vm716_vm1, %v715_v1  ;;  %587 = vmatprep.mubr.msk.bf16.mxu1 %vm716_vm1, %v715_v1  ;;  %p653_p11 = pnand %p652_p10, %p783_p5 }
  0x18   : > { %p660_p1 = por %p659_p0, %p658_p13 }
  0x19   : > { %p654_p12 = pneg %p653_p11 }
  0x1b   : > { %p661_p2 = pnand %p660_p1, %p654_p12 }
  0x1e   : > { %564 = vmatmul.mubr.msk.bf16.gmra.mrb[4].mxu0 %vm225_vm2, %v209_v14  ;;  %588 = vmatmul.mubr.msk.bf16.gmra.mrb[4].mxu1 %vm225_vm2, %v190_v15 }
  0x1f   : > { %567 = vmatprep.mubr.msk.bf16.mxu0 %vm716_vm1, %v715_v1  ;;  %591 = vmatprep.mubr.msk.bf16.mxu1 %vm716_vm1, %v715_v1 }
  0x26   : > { %568 = vmatmul.mubr.msk.bf16.gmra.mrb[8].mxu0 %vm225_vm2, %v210_v18  ;;  %592 = vmatmul.mubr.msk.bf16.gmra.mrb[8].mxu1 %vm225_vm2, %v191_v19 }
  0x27   : > { %571 = vmatprep.mubr.msk.bf16.mxu0 %vm716_vm1, %v715_v1  ;;  %595 = vmatprep.mubr.msk.bf16.mxu1 %vm716_vm1, %v715_v1 }
  0x2e   : > { %572 = vmatmul.mubr.msk.bf16.gmra.mrb[12].mxu0 %vm225_vm2, %v211_v22  ;;  %596 = vmatmul.mubr.msk.bf16.gmra.mrb[12].mxu1 %vm225_vm2, %v192_v23 }
  0x2f   : > { %575 = vmatprep.mubr.msk.bf16.mxu0 %vm716_vm1, %v715_v1  ;;  %599 = vmatprep.mubr.msk.bf16.mxu1 %vm716_vm1, %v715_v1 }
  0x36   : > { %576 = vmatmul.mubr.msk.bf16.gmra.mrb[16].mxu0 %vm225_vm2, %v212_v25  ;;  %600 = vmatmul.mubr.msk.bf16.gmra.mrb[16].mxu1 %vm225_vm2, %v193_v26 }
  0xe9   : > { %v279_v27 = vpop.f32.mrb[0].mxu0  ;;  %v378_v28 = vpop.f32.mrb[0].mxu1 }
  0xea   : > { %v561_v30 = vpop.f32.mrb[1].mxu0  ;;  %v379_v31 = vadd.f32 %v378_v28, %v279_v27  ;;  %v585_v32 = vpop.f32.mrb[1].mxu1 }
  0xeb   : > { %v282_v33 = vpop.f32.mrb[2].mxu0  ;;  %v381_v34 = vpop.f32.mrb[2].mxu1 }
  0xec   : > { %v562_v35 = vpop.f32.mrb[3].mxu0  ;;  %v423_v36 = vadd.f32 %v847_v29, %v379_v31  ;;  %v382_v37 = vadd.f32 %v381_v34, %v282_v33  ;;  %v586_v38 = vpop.f32.mrb[3].mxu1 }
  0xee   : > { %432 = vst [vmem:[%s850_s23] sm:$0xff] %v423_v36  ;;  %v424_v39 = vadd.f32 %v847_v29, %v382_v37 }
  0xf0   : > { %433 = vst [vmem:[%s850_s23 + $0x8] sm:$0xff] %v424_v39 }
  0xf1   : > { %v287_v40 = vpop.f32.mrb[4].mxu0  ;;  %v386_v41 = vpop.f32.mrb[4].mxu1 }
  0xf2   : > { %v565_v42 = vpop.f32.mrb[5].mxu0  ;;  %v387_v43 = vadd.f32 %v386_v41, %v287_v40  ;;  %v589_v44 = vpop.f32.mrb[5].mxu1 }
  0xf3   : > { %v290_v45 = vpop.f32.mrb[6].mxu0  ;;  %v389_v46 = vpop.f32.mrb[6].mxu1 }
  0xf4   : > { %v566_v47 = vpop.f32.mrb[7].mxu0  ;;  %v425_v48 = vadd.f32 %v847_v29, %v387_v43  ;;  %v390_v49 = vadd.f32 %v389_v46, %v290_v45  ;;  %v590_v50 = vpop.f32.mrb[7].mxu1 }
  0xf6   : > { %434 = vst [vmem:[%s850_s23 + $0x10] sm:$0xff] %v425_v48  ;;  %v426_v51 = vadd.f32 %v847_v29, %v390_v49 }
  0xf8   : > { %435 = vst [vmem:[%s850_s23 + $0x18] sm:$0xff] %v426_v51 }
  0xf9   : > { %v295_v52 = vpop.f32.mrb[8].mxu0  ;;  %v394_v53 = vpop.f32.mrb[8].mxu1 }
  0xfa   : > { %v569_v54 = vpop.f32.mrb[9].mxu0  ;;  %v395_v55 = vadd.f32 %v394_v53, %v295_v52  ;;  %v593_v56 = vpop.f32.mrb[9].mxu1 }
  0xfb   : > { %v298_v57 = vpop.f32.mrb[10].mxu0  ;;  %v397_v58 = vpop.f32.mrb[10].mxu1 }
  0xfc   : > { %v570_v59 = vpop.f32.mrb[11].mxu0  ;;  %v427_v60 = vadd.f32 %v847_v29, %v395_v55  ;;  %v398_v61 = vadd.f32 %v397_v58, %v298_v57  ;;  %v594_v62 = vpop.f32.mrb[11].mxu1 }
  0xfe   : > { %436 = vst [vmem:[%s850_s23 + $0x20] sm:$0xff] %v427_v60  ;;  %v428_v63 = vadd.f32 %v847_v29, %v398_v61 }
 0x100   : > { %437 = vst [vmem:[%s850_s23 + $0x28] sm:$0xff] %v428_v63 }
 0x101   : > { %v303_v0 = vpop.f32.mrb[12].mxu0  ;;  %v402_v1 = vpop.f32.mrb[12].mxu1 }
 0x102   : > { %v573_v2 = vpop.f32.mrb[13].mxu0  ;;  %v403_v3 = vadd.f32 %v402_v1, %v303_v0  ;;  %v597_v4 = vpop.f32.mrb[13].mxu1 }
 0x103   : > { %v306_v5 = vpop.f32.mrb[14].mxu0  ;;  %v405_v6 = vpop.f32.mrb[14].mxu1 }
 0x104   : > { %v574_v7 = vpop.f32.mrb[15].mxu0  ;;  %v429_v8 = vadd.f32 %v847_v29, %v403_v3  ;;  %v406_v9 = vadd.f32 %v405_v6, %v306_v5  ;;  %v598_v10 = vpop.f32.mrb[15].mxu1 }
 0x106   : > { %438 = vst [vmem:[%s850_s23 + $0x30] sm:$0xff] %v429_v8  ;;  %v430_v11 = vadd.f32 %v847_v29, %v406_v9 }
 0x108   : > { %439 = vst [vmem:[%s850_s23 + $0x38] sm:$0xff] %v430_v11 }
 0x109   : > { %v311_v12 = vpop.f32.mrb[16].mxu0  ;;  %v410_v13 = vpop.f32.mrb[16].mxu1 }
 0x10a   : > { %v577_v14 = vpop.f32.mrb[17].mxu0  ;;  %v411_v15 = vadd.f32 %v410_v13, %v311_v12  ;;  %v601_v16 = vpop.f32.mrb[17].mxu1 }
 0x10b   : > { %v314_v17 = vpop.f32.mrb[18].mxu0  ;;  %v413_v18 = vpop.f32.mrb[18].mxu1 }
 0x10c   : > { %v578_v19 = vpop.f32.mrb[19].mxu0  ;;  %v431_v20 = vadd.f32 %v847_v29, %v411_v15  ;;  %v602_v21 = vpop.f32.mrb[19].mxu1 }
 0x10e   : > { %440 = vst [vmem:[%s850_s23 + $0x40] sm:$0xff] %v431_v20 }
 0x10f   : > { %664 = shalt.err (!%p661_p2)
}
 0x110   : > { %s665_s10 = scalar_lea.hbm %s872_s5, 1152  ;;  %s669_s13 = scalar_lea.hbm %s925_s4, 2304 }
 0x111   : > { %p666_p3 = scmp.ne.s32.totalorder %s872_s5, %s665_s10  ;;  %p670_p8 = scmp.lt.u32.totalorder %s872_s5, %s925_s4 }
 0x112   : > { %p671_p9 = scmp.lt.u32.totalorder %s669_s13, %s665_s10  ;;  %p673_p11 = scmp.lt.u32.totalorder %s665_s10, %s872_s5 }
 0x113   : > { %p667_p4 = pnand %p666_p3, %p783_p5 }
 0x114   : > { %p672_p10 = por %p671_p9, %p670_p8 }
 0x115   : > { %p668_p7 = pneg %p667_p4 }
 0x116   : > { %p674_p12 = por %p673_p11, %p672_p10 }
 0x118   : > { %p675_p13 = pnand %p674_p12, %p668_p7 }
 0x11a   : > { %678 = shalt.err (!%p675_p13)
}
 0x11b   : > { %s718_s22 = smov 128   ;;  %s719_s23 = smov 8  }
 0x11c   : > { %604 = dma.vmem_to_hbm [thread:$0]  (%p783_p5), %s874_s28, 1152, %s872_s5, %s880_s19, %s718_s22, %s718_s22, %s719_s23  }
 0x11d PF: > { %p610_p0 = scmp.ge.s32.totalorder %s713_s18, 2  ;;  %s470_s27 = sand.u32 1, %s701_s15  }
 0x11e   : > { %s471_s29 = scalar_lea.sflag [#allocation3], %s470_s27 }
 0x11f   : > { %p607_p1 = pnand %p610_p0, %p787_p6 }
 0x121   : > { %696 = dma.done.wait (!%p607_p1), %s471_s29, 1152  }
 0x122   : > { %698 = vsyncadd (!%p607_p1), %s471_s29, 4294966144  ;;  %p14_p2 = scmp.ge.s32.totalorder %s770_s21, 4   ;;  %s928_s15 = smov %s705_s16 }
 0x123   : > { %s929_s16 = smov %s709_s17  ;;  %s930_s17 = smov %s781_s24 }
 0x124   : > { %s931_s18 = smov %s770_s21  ;;  %16 = sbr.rel (!%p14_p2) target bundleno = 3 (0x3), region = 70 }
 0x12b   :  { %476 = vsyncpa [#allocation3], 1 }
 0x12c   :  { %478 = vsyncpa [#allocation3 + $0x1], 1 }

</bundles_post_ra>
